<compile_context>
chip_gen: v6e
topology: v6e:2x2x1
jax: 0.10.0
libtpu: 0.0.40
codegen_flags: <defaults>
</compile_context>

<pallas_src>
import functools
import math

import jax
import jax.numpy as jnp
from jax import lax
from jax.experimental import pallas as pl
from jax.experimental.pallas import tpu as pltpu


def _autocorr_kernel(q_ref, kr_ref, v_ref, o_ref, *, top_k):
    # Block shapes (time on sublanes, channels on lanes):
    #   q/kr : [1, L, CE]   (kr is the circularly time-reversed keys)
    #   v/o  : [1, L, CD]
    q = q_ref[0].astype(jnp.float32)      # [L, CE]
    kr = kr_ref[0].astype(jnp.float32)    # [L, CE]
    v = v_ref[0].astype(jnp.float32)      # [L, CD]
    L, ce = q.shape

    # ---- 1. channel-reduced lag products on the MXU --------------------------
    # g[n, m] = sum_c q[c, n] * k[c, (L - m) mod L]   (single q @ kr^T matmul)
    g = lax.dot_general(q, kr, (((1,), (1,)), ((), ())),
                        preferred_element_type=jnp.float32)        # [L, L]

    # ---- 2. wrap-diagonal reduction via O(log2 L) static skew rolls ----------
    # corr[tau] = sum over stripes {n + m == tau (mod L)} of g.
    # Roll row n right by n (binary decomposition of n), then column-sum.
    row = lax.broadcasted_iota(jnp.int32, (L, L), 0)
    for b in range((L - 1).bit_length()):
        amt = (1 << b) % L
        rolled = jnp.roll(g, amt, axis=1)          # static shift: lane slices + concat
        g = jnp.where((row & (1 << b)) != 0, rolled, g)
    mean_value = jnp.sum(g, axis=0, keepdims=True) * (1.0 / ce)    # [1, L]

    # ---- 3. per-batch top-k lags + softmax weights ----------------------------
    lane = lax.broadcasted_iota(jnp.int32, (1, L), 1)
    mv = mean_value
    weights, delays = [], []
    for _ in range(top_k):
        w = jnp.max(mv, axis=1, keepdims=True)                            # [1, 1]
        d = jnp.min(jnp.where(mv >= w, lane, L), axis=1, keepdims=True)   # [1, 1]
        weights.append(w)
        delays.append(d)
        mv = jnp.where(lane == d, -jnp.inf, mv)

    w_max = weights[0]                      # first pick is the global max
    exps = [jnp.exp(w - w_max) for w in weights]
    denom = exps[0]
    for e in exps[1:]:
        denom = denom + e
    inv_denom = 1.0 / denom

    # ---- 4. aggregation matrix A[t, s] = sum_i softmax_i * [s == (t+d_i) mod L]
    t_idx = lax.broadcasted_iota(jnp.int32, (L, L), 0)
    s_idx = lax.broadcasted_iota(jnp.int32, (L, L), 1)
    agg = jnp.zeros((L, L), jnp.float32)
    for e, d in zip(exps, delays):
        shifted = t_idx + d                                 # [L, L], 0 <= . < 2L
        shifted = jnp.where(shifted >= L, shifted - L, shifted)
        agg = agg + (e * inv_denom) * (s_idx == shifted).astype(jnp.float32)

    # ---- 5. delays_agg = A @ V on the MXU -------------------------------------
    out = jnp.dot(agg, v, preferred_element_type=jnp.float32)      # [L, CD]
    o_ref[0] = out.astype(o_ref.dtype)


def auto_correlation(queries, keys, values, *, factor=1):
    """Eval-mode AutoCorrelation forward. Returns (V, None) like the module."""
    B, L, H, E = queries.shape
    _, S, _, D = values.shape

    # Length alignment, exactly as in the PyTorch forward.
    if L > S:
        values = jnp.concatenate(
            [values, jnp.zeros((B, L - S, H, D), values.dtype)], axis=1)
        keys = jnp.concatenate(
            [keys, jnp.zeros((B, L - S, H, E), keys.dtype)], axis=1)
    else:
        values = values[:, :L]
        keys = keys[:, :L]

    ce, cd = H * E, H * D

    # Time stays second-minor, channels (H*E / H*D) on lanes: pure reshapes,
    # no XLA transposes in or out of the kernel.
    q_t = queries.reshape(B, L, ce)
    k_t = keys.reshape(B, L, ce)
    v_t = values.reshape(B, L, cd)

    # Circular time reversal of keys: kr[:, m] = k[:, (L - m) mod L].  Folding
    # the reversal here makes the in-kernel lag reduction a plain anti-diagonal
    # stripe sum of one q @ kr^T matmul.
    kr_t = jnp.roll(jnp.flip(k_t, axis=1), 1, axis=1)

    top_k = max(1, int(factor * math.log(L)))

    cost = pl.CostEstimate(
        flops=2 * B * L * L * (ce + cd),
        transcendentals=B * top_k,
        bytes_accessed=4 * B * L * (2 * ce + 2 * cd),
    )

    out = pl.pallas_call(
        functools.partial(_autocorr_kernel, top_k=top_k),
        out_shape=jax.ShapeDtypeStruct((B, L, cd), jnp.float32),
        grid=(B,),
        in_specs=[
            pl.BlockSpec((1, L, ce), lambda b: (b, 0, 0)),
            pl.BlockSpec((1, L, ce), lambda b: (b, 0, 0)),
            pl.BlockSpec((1, L, cd), lambda b: (b, 0, 0)),
        ],
        out_specs=pl.BlockSpec((1, L, cd), lambda b: (b, 0, 0)),
        compiler_params=pltpu.CompilerParams(
            dimension_semantics=("parallel",)),
        cost_estimate=cost,
    )(q_t, kr_t, v_t)

    # [B, L, H*D] -> [B, L, H, D]   (== V.permute(0, 3, 1, 2) in the module)
    V = out.reshape(B, L, H, D)
    return V, None


def _reference_autocorrelation(queries, keys, values, factor=1):
    """Pure-JAX mirror of the PyTorch eval-mode forward (FFT-based)."""
    B, L, H, E = queries.shape
    _, S, _, D = values.shape
    if L > S:
        values = jnp.concatenate(
            [values, jnp.zeros((B, L - S, H, D), values.dtype)], axis=1)
        keys = jnp.concatenate(
            [keys, jnp.zeros((B, L - S, H, E), keys.dtype)], axis=1)
    else:
        values = values[:, :L]
        keys = keys[:, :L]
    qp = jnp.transpose(queries, (0, 2, 3, 1))     # [B, H, E, L]
    kp = jnp.transpose(keys, (0, 2, 3, 1))
    vp = jnp.transpose(values, (0, 2, 3, 1))      # [B, H, D, L]

    q_fft = jnp.fft.rfft(qp, axis=-1)
    k_fft = jnp.fft.rfft(kp, axis=-1)
    corr = jnp.fft.irfft(q_fft * jnp.conj(k_fft), n=L, axis=-1)   # [B, H, E, L]

    top_k = int(factor * math.log(L))
    mean_value = jnp.mean(jnp.mean(corr, axis=1), axis=1)         # [B, L]
    weights, delay = lax.top_k(mean_value, top_k)                 # [B, top_k]
    tmp_corr = jax.nn.softmax(weights, axis=-1)

    init_index = jnp.arange(L)
    agg = jnp.zeros_like(vp)
    for i in range(top_k):
        idx = (init_index[None, None, None, :]
               + delay[:, i][:, None, None, None]) % L            # circular gather
        pattern = jnp.take_along_axis(
            vp, jnp.broadcast_to(idx, vp.shape), axis=-1)
        agg = agg + pattern * tmp_corr[:, i][:, None, None, None]
    return jnp.transpose(agg, (0, 3, 1, 2))                       # [B, L, H, D]


if __name__ == "__main__":
    # Small deterministic example: B=2, seq L=S=32, heads H=4, E=D=8.
    B, L, H, E, D = 2, 32, 4, 8, 8
    S = L
    key = jax.random.PRNGKey(0)
    kq, kk_, kv = jax.random.split(key, 3)
    queries = jax.random.normal(kq, (B, L, H, E), dtype=jnp.float32)
    keys = jax.random.normal(kk_, (B, S, H, E), dtype=jnp.float32)
    values = jax.random.normal(kv, (B, S, H, D), dtype=jnp.float32)

    V, attn = auto_correlation(queries, keys, values, factor=1)
    V = jax.block_until_ready(V)

    ref = _reference_autocorrelation(queries, keys, values, factor=1)
    assert V.shape == (B, L, H, D)
    assert attn is None
    assert jnp.allclose(V, ref, atol=2e-3, rtol=2e-3), \
        float(jnp.max(jnp.abs(V - ref)))

    print("KERNEL_OK")
</pallas_src>

<mosaic_0001>
module attributes {stable_mosaic.version = 11 : i64} {
  func.func @_autocorr_kernel(%arg0: i32, %arg1: memref<1x32x32xf32, #tpu.memory_space<vmem>>, %arg2: memref<1x32x32xf32, #tpu.memory_space<vmem>>, %arg3: memref<1x32x32xf32, #tpu.memory_space<vmem>>, %arg4: memref<1x32x32xf32, #tpu.memory_space<vmem>>) attributes {dimension_semantics = [#tpu.dimension_semantics<parallel>], iteration_bounds = array<i64: 2>, scalar_prefetch = 0 : i64, scratch_operands = 0 : i64, tpu.core_type = #tpu.core_type<tc>, window_params = [{transform_indices = @transform_0, window_bounds = array<i64: 1, 32, 32>}, {transform_indices = @transform_1, window_bounds = array<i64: 1, 32, 32>}, {transform_indices = @transform_2, window_bounds = array<i64: 1, 32, 32>}, {transform_indices = @transform_3, window_bounds = array<i64: 1, 32, 32>}]} {
    %c0 = arith.constant 0 : index
    %c0_0 = arith.constant 0 : index
    %c0_1 = arith.constant 0 : index
    %0 = vector.load %arg1[%c0, %c0_0, %c0_1] : memref<1x32x32xf32, #tpu.memory_space<vmem>>, vector<1x32x32xf32>
    %1 = vector.shape_cast %0 : vector<1x32x32xf32> to vector<32x32xf32>
    %c0_2 = arith.constant 0 : index
    %c0_3 = arith.constant 0 : index
    %c0_4 = arith.constant 0 : index
    %2 = vector.load %arg2[%c0_2, %c0_3, %c0_4] : memref<1x32x32xf32, #tpu.memory_space<vmem>>, vector<1x32x32xf32>
    %3 = vector.shape_cast %2 : vector<1x32x32xf32> to vector<32x32xf32>
    %c0_5 = arith.constant 0 : index
    %c0_6 = arith.constant 0 : index
    %c0_7 = arith.constant 0 : index
    %4 = vector.load %arg3[%c0_5, %c0_6, %c0_7] : memref<1x32x32xf32, #tpu.memory_space<vmem>>, vector<1x32x32xf32>
    %5 = vector.shape_cast %4 : vector<1x32x32xf32> to vector<32x32xf32>
    %cst = arith.constant dense<0.000000e+00> : vector<32x32xf32>
    %6 = tpu.matmul %1, %3, %cst {dimension_numbers = #tpu.dot_dimension_numbers<[1], [1], [0], [0], [0, 0, 1, 0], [], []>} : vector<32x32xf32>, vector<32x32xf32>, vector<32x32xf32> -> vector<32x32xf32>
    %7 = tpu.iota {dimensions = array<i32: 0>} : vector<32x32xi32>
    %8 = vector.extract_strided_slice %6 {offsets = [0, 31], sizes = [32, 1], strides = [1, 1]} : vector<32x32xf32> to vector<32x1xf32>
    %9 = vector.extract_strided_slice %6 {offsets = [0, 0], sizes = [32, 31], strides = [1, 1]} : vector<32x32xf32> to vector<32x31xf32>
    %10 = tpu.concatenate %8, %9 in 1 : vector<32x1xf32>, vector<32x31xf32> -> vector<32x32xf32>
    %c1_i32 = arith.constant 1 : i32
    %11 = vector.broadcast %c1_i32 : i32 to vector<32x32xi32>
    %12 = arith.andi %7, %11 : vector<32x32xi32>
    %c0_i32 = arith.constant 0 : i32
    %13 = vector.broadcast %c0_i32 : i32 to vector<32x32xi32>
    %14 = arith.cmpi ne, %12, %13 : vector<32x32xi32>
    %15 = arith.select %14, %10, %6 : vector<32x32xi1>, vector<32x32xf32>
    %16 = vector.extract_strided_slice %15 {offsets = [0, 30], sizes = [32, 2], strides = [1, 1]} : vector<32x32xf32> to vector<32x2xf32>
    %17 = vector.extract_strided_slice %15 {offsets = [0, 0], sizes = [32, 30], strides = [1, 1]} : vector<32x32xf32> to vector<32x30xf32>
    %18 = tpu.concatenate %16, %17 in 1 : vector<32x2xf32>, vector<32x30xf32> -> vector<32x32xf32>
    %c2_i32 = arith.constant 2 : i32
    %19 = vector.broadcast %c2_i32 : i32 to vector<32x32xi32>
    %20 = arith.andi %7, %19 : vector<32x32xi32>
    %c0_i32_8 = arith.constant 0 : i32
    %21 = vector.broadcast %c0_i32_8 : i32 to vector<32x32xi32>
    %22 = arith.cmpi ne, %20, %21 : vector<32x32xi32>
    %23 = arith.select %22, %18, %15 : vector<32x32xi1>, vector<32x32xf32>
    %24 = vector.extract_strided_slice %23 {offsets = [0, 28], sizes = [32, 4], strides = [1, 1]} : vector<32x32xf32> to vector<32x4xf32>
    %25 = vector.extract_strided_slice %23 {offsets = [0, 0], sizes = [32, 28], strides = [1, 1]} : vector<32x32xf32> to vector<32x28xf32>
    %26 = tpu.concatenate %24, %25 in 1 : vector<32x4xf32>, vector<32x28xf32> -> vector<32x32xf32>
    %c4_i32 = arith.constant 4 : i32
    %27 = vector.broadcast %c4_i32 : i32 to vector<32x32xi32>
    %28 = arith.andi %7, %27 : vector<32x32xi32>
    %c0_i32_9 = arith.constant 0 : i32
    %29 = vector.broadcast %c0_i32_9 : i32 to vector<32x32xi32>
    %30 = arith.cmpi ne, %28, %29 : vector<32x32xi32>
    %31 = arith.select %30, %26, %23 : vector<32x32xi1>, vector<32x32xf32>
    %32 = vector.extract_strided_slice %31 {offsets = [0, 24], sizes = [32, 8], strides = [1, 1]} : vector<32x32xf32> to vector<32x8xf32>
    %33 = vector.extract_strided_slice %31 {offsets = [0, 0], sizes = [32, 24], strides = [1, 1]} : vector<32x32xf32> to vector<32x24xf32>
    %34 = tpu.concatenate %32, %33 in 1 : vector<32x8xf32>, vector<32x24xf32> -> vector<32x32xf32>
    %c8_i32 = arith.constant 8 : i32
    %35 = vector.broadcast %c8_i32 : i32 to vector<32x32xi32>
    %36 = arith.andi %7, %35 : vector<32x32xi32>
    %c0_i32_10 = arith.constant 0 : i32
    %37 = vector.broadcast %c0_i32_10 : i32 to vector<32x32xi32>
    %38 = arith.cmpi ne, %36, %37 : vector<32x32xi32>
    %39 = arith.select %38, %34, %31 : vector<32x32xi1>, vector<32x32xf32>
    %40 = vector.extract_strided_slice %39 {offsets = [0, 16], sizes = [32, 16], strides = [1, 1]} : vector<32x32xf32> to vector<32x16xf32>
    %41 = vector.extract_strided_slice %39 {offsets = [0, 0], sizes = [32, 16], strides = [1, 1]} : vector<32x32xf32> to vector<32x16xf32>
    %42 = tpu.concatenate %40, %41 in 1 : vector<32x16xf32>, vector<32x16xf32> -> vector<32x32xf32>
    %c16_i32 = arith.constant 16 : i32
    %43 = vector.broadcast %c16_i32 : i32 to vector<32x32xi32>
    %44 = arith.andi %7, %43 : vector<32x32xi32>
    %c0_i32_11 = arith.constant 0 : i32
    %45 = vector.broadcast %c0_i32_11 : i32 to vector<32x32xi32>
    %46 = arith.cmpi ne, %44, %45 : vector<32x32xi32>
    %47 = arith.select %46, %42, %39 : vector<32x32xi1>, vector<32x32xf32>
    %cst_12 = arith.constant dense<0.000000e+00> : vector<32xf32>
    %48 = vector.multi_reduction <add>, %47, %cst_12 [0] : vector<32x32xf32> to vector<32xf32>
    %49 = vector.shape_cast %48 : vector<32xf32> to vector<1x32xf32>
    %cst_13 = arith.constant 3.125000e-02 : f32
    %50 = vector.broadcast %cst_13 : f32 to vector<1x32xf32>
    %51 = arith.mulf %49, %50 : vector<1x32xf32>
    %52 = tpu.iota {dimensions = array<i32: 1>} : vector<1x32xi32>
    %cst_14 = arith.constant dense<0xFF800000> : vector<1xf32>
    %53 = vector.multi_reduction <maximumf>, %51, %cst_14 [1] : vector<1x32xf32> to vector<1xf32>
    %54 = vector.shape_cast %53 : vector<1xf32> to vector<1x1xf32>
    %55 = vector.broadcast %54 : vector<1x1xf32> to vector<1x32xf32>
    %56 = arith.cmpf oge, %51, %55 : vector<1x32xf32>
    %c32_i32 = arith.constant 32 : i32
    %57 = vector.broadcast %c32_i32 : i32 to vector<1x32xi32>
    %58 = arith.select %56, %52, %57 : vector<1x32xi1>, vector<1x32xi32>
    %cst_15 = arith.constant dense<2147483647> : vector<1xi32>
    %59 = vector.multi_reduction <minsi>, %58, %cst_15 [1] : vector<1x32xi32> to vector<1xi32>
    %60 = vector.shape_cast %59 : vector<1xi32> to vector<1x1xi32>
    %61 = vector.broadcast %60 : vector<1x1xi32> to vector<1x32xi32>
    %62 = arith.cmpi eq, %52, %61 : vector<1x32xi32>
    %cst_16 = arith.constant 0xFF800000 : f32
    %63 = vector.broadcast %cst_16 : f32 to vector<1x32xf32>
    %64 = arith.select %62, %63, %51 : vector<1x32xi1>, vector<1x32xf32>
    %cst_17 = arith.constant dense<0xFF800000> : vector<1xf32>
    %65 = vector.multi_reduction <maximumf>, %64, %cst_17 [1] : vector<1x32xf32> to vector<1xf32>
    %66 = vector.shape_cast %65 : vector<1xf32> to vector<1x1xf32>
    %67 = vector.broadcast %66 : vector<1x1xf32> to vector<1x32xf32>
    %68 = arith.cmpf oge, %64, %67 : vector<1x32xf32>
    %c32_i32_18 = arith.constant 32 : i32
    %69 = vector.broadcast %c32_i32_18 : i32 to vector<1x32xi32>
    %70 = arith.select %68, %52, %69 : vector<1x32xi1>, vector<1x32xi32>
    %cst_19 = arith.constant dense<2147483647> : vector<1xi32>
    %71 = vector.multi_reduction <minsi>, %70, %cst_19 [1] : vector<1x32xi32> to vector<1xi32>
    %72 = vector.shape_cast %71 : vector<1xi32> to vector<1x1xi32>
    %73 = vector.broadcast %72 : vector<1x1xi32> to vector<1x32xi32>
    %74 = arith.cmpi eq, %52, %73 : vector<1x32xi32>
    %cst_20 = arith.constant 0xFF800000 : f32
    %75 = vector.broadcast %cst_20 : f32 to vector<1x32xf32>
    %76 = arith.select %74, %75, %64 : vector<1x32xi1>, vector<1x32xf32>
    %cst_21 = arith.constant dense<0xFF800000> : vector<1xf32>
    %77 = vector.multi_reduction <maximumf>, %76, %cst_21 [1] : vector<1x32xf32> to vector<1xf32>
    %78 = vector.shape_cast %77 : vector<1xf32> to vector<1x1xf32>
    %79 = vector.broadcast %78 : vector<1x1xf32> to vector<1x32xf32>
    %80 = arith.cmpf oge, %76, %79 : vector<1x32xf32>
    %c32_i32_22 = arith.constant 32 : i32
    %81 = vector.broadcast %c32_i32_22 : i32 to vector<1x32xi32>
    %82 = arith.select %80, %52, %81 : vector<1x32xi1>, vector<1x32xi32>
    %cst_23 = arith.constant dense<2147483647> : vector<1xi32>
    %83 = vector.multi_reduction <minsi>, %82, %cst_23 [1] : vector<1x32xi32> to vector<1xi32>
    %84 = vector.shape_cast %83 : vector<1xi32> to vector<1x1xi32>
    %85 = arith.subf %54, %54 : vector<1x1xf32>
    %86 = math.exp %85 : vector<1x1xf32>
    %87 = arith.subf %66, %54 : vector<1x1xf32>
    %88 = math.exp %87 : vector<1x1xf32>
    %89 = arith.subf %78, %54 : vector<1x1xf32>
    %90 = math.exp %89 : vector<1x1xf32>
    %91 = arith.addf %86, %88 : vector<1x1xf32>
    %92 = arith.addf %91, %90 : vector<1x1xf32>
    %cst_24 = arith.constant 1.000000e+00 : f32
    %93 = vector.broadcast %cst_24 : f32 to vector<1x1xf32>
    %94 = arith.divf %93, %92 : vector<1x1xf32>
    %95 = tpu.iota {dimensions = array<i32: 0>} : vector<32x32xi32>
    %96 = tpu.iota {dimensions = array<i32: 1>} : vector<32x32xi32>
    %cst_25 = arith.constant 0.000000e+00 : f32
    %97 = vector.broadcast %cst_25 : f32 to vector<32x32xf32>
    %98 = vector.broadcast %60 : vector<1x1xi32> to vector<32x32xi32>
    %99 = arith.addi %95, %98 : vector<32x32xi32>
    %c32_i32_26 = arith.constant 32 : i32
    %100 = vector.broadcast %c32_i32_26 : i32 to vector<32x32xi32>
    %101 = arith.cmpi sge, %99, %100 : vector<32x32xi32>
    %c32_i32_27 = arith.constant 32 : i32
    %102 = vector.broadcast %c32_i32_27 : i32 to vector<32x32xi32>
    %103 = arith.subi %99, %102 : vector<32x32xi32>
    %104 = arith.select %101, %103, %99 : vector<32x32xi1>, vector<32x32xi32>
    %105 = arith.mulf %86, %94 : vector<1x1xf32>
    %106 = arith.cmpi eq, %96, %104 : vector<32x32xi32>
    %107 = arith.extui %106 : vector<32x32xi1> to vector<32x32xi32>
    %108 = arith.sitofp %107 : vector<32x32xi32> to vector<32x32xf32>
    %109 = vector.broadcast %105 : vector<1x1xf32> to vector<32x32xf32>
    %110 = arith.mulf %109, %108 : vector<32x32xf32>
    %111 = arith.addf %97, %110 : vector<32x32xf32>
    %112 = vector.broadcast %72 : vector<1x1xi32> to vector<32x32xi32>
    %113 = arith.addi %95, %112 : vector<32x32xi32>
    %c32_i32_28 = arith.constant 32 : i32
    %114 = vector.broadcast %c32_i32_28 : i32 to vector<32x32xi32>
    %115 = arith.cmpi sge, %113, %114 : vector<32x32xi32>
    %c32_i32_29 = arith.constant 32 : i32
    %116 = vector.broadcast %c32_i32_29 : i32 to vector<32x32xi32>
    %117 = arith.subi %113, %116 : vector<32x32xi32>
    %118 = arith.select %115, %117, %113 : vector<32x32xi1>, vector<32x32xi32>
    %119 = arith.mulf %88, %94 : vector<1x1xf32>
    %120 = arith.cmpi eq, %96, %118 : vector<32x32xi32>
    %121 = arith.extui %120 : vector<32x32xi1> to vector<32x32xi32>
    %122 = arith.sitofp %121 : vector<32x32xi32> to vector<32x32xf32>
    %123 = vector.broadcast %119 : vector<1x1xf32> to vector<32x32xf32>
    %124 = arith.mulf %123, %122 : vector<32x32xf32>
    %125 = arith.addf %111, %124 : vector<32x32xf32>
    %126 = vector.broadcast %84 : vector<1x1xi32> to vector<32x32xi32>
    %127 = arith.addi %95, %126 : vector<32x32xi32>
    %c32_i32_30 = arith.constant 32 : i32
    %128 = vector.broadcast %c32_i32_30 : i32 to vector<32x32xi32>
    %129 = arith.cmpi sge, %127, %128 : vector<32x32xi32>
    %c32_i32_31 = arith.constant 32 : i32
    %130 = vector.broadcast %c32_i32_31 : i32 to vector<32x32xi32>
    %131 = arith.subi %127, %130 : vector<32x32xi32>
    %132 = arith.select %129, %131, %127 : vector<32x32xi1>, vector<32x32xi32>
    %133 = arith.mulf %90, %94 : vector<1x1xf32>
    %134 = arith.cmpi eq, %96, %132 : vector<32x32xi32>
    %135 = arith.extui %134 : vector<32x32xi1> to vector<32x32xi32>
    %136 = arith.sitofp %135 : vector<32x32xi32> to vector<32x32xf32>
    %137 = vector.broadcast %133 : vector<1x1xf32> to vector<32x32xf32>
    %138 = arith.mulf %137, %136 : vector<32x32xf32>
    %139 = arith.addf %125, %138 : vector<32x32xf32>
    %cst_32 = arith.constant dense<0.000000e+00> : vector<32x32xf32>
    %140 = tpu.matmul %139, %5, %cst_32 {dimension_numbers = #tpu.dot_dimension_numbers<[1], [0], [0], [1], [0, 0, 1, 1], [], []>} : vector<32x32xf32>, vector<32x32xf32>, vector<32x32xf32> -> vector<32x32xf32>
    %c0_33 = arith.constant 0 : index
    %c0_34 = arith.constant 0 : index
    %c0_35 = arith.constant 0 : index
    %141 = vector.load %arg4[%c0_33, %c0_34, %c0_35] : memref<1x32x32xf32, #tpu.memory_space<vmem>>, vector<1x32x32xf32>
    %142 = vector.shape_cast %141 : vector<1x32x32xf32> to vector<32x32xf32>
    %143 = vector.shape_cast %140 : vector<32x32xf32> to vector<1x32x32xf32>
    tpu.vector_store %arg4[%c0_33, %c0_34, %c0_35], %143 {strides = array<i32>} : memref<1x32x32xf32, #tpu.memory_space<vmem>>, vector<1x32x32xf32>,
    return
  }
  func.func @transform_0(%arg0: i32) -> (i32, i32, i32) {
    %c0_i32 = arith.constant 0 : i32
    %c0_i32_0 = arith.constant 0 : i32
    %c0_i32_1 = arith.constant 0 : i32
    return %arg0, %c0_i32, %c0_i32_0 : i32, i32, i32
  }
  func.func @transform_1(%arg0: i32) -> (i32, i32, i32) {
    %c0_i32 = arith.constant 0 : i32
    %c0_i32_0 = arith.constant 0 : i32
    %c0_i32_1 = arith.constant 0 : i32
    return %arg0, %c0_i32, %c0_i32_0 : i32, i32, i32
  }
  func.func @transform_2(%arg0: i32) -> (i32, i32, i32) {
    %c0_i32 = arith.constant 0 : i32
    %c0_i32_0 = arith.constant 0 : i32
    %c0_i32_1 = arith.constant 0 : i32
    return %arg0, %c0_i32, %c0_i32_0 : i32, i32, i32
  }
  func.func @transform_3(%arg0: i32) -> (i32, i32, i32) {
    %c0_i32 = arith.constant 0 : i32
    %c0_i32_0 = arith.constant 0 : i32
    %c0_i32_1 = arith.constant 0 : i32
    return %arg0, %c0_i32, %c0_i32_0 : i32, i32, i32
  }
}

</mosaic_0001>

<bundles_post_ra>
// kernel: tpu_custom_call.1
= control target key start
LH: loop header
LB: loop body
LE: loop exit
PB: predicated region body
PF: predicated region fallthrough
CT: control target
= control target key end

     0   :  { %s1825_s0 = inlined_call_operand.hbm [shape: f32[2,32,32], index: 0, kind: input, shape index: {}]   ;;  %s1826_s1 = inlined_call_operand.hbm [shape: f32[2,32,32], index: 1, kind: input, shape index: {}]   ;;  %s1827_s2 = inlined_call_operand.hbm [shape: f32[2,32,32], index: 2, kind: input, shape index: {}]   ;;  %s1828_s3 = inlined_call_operand.hbm [shape: f32[2,32,32], index: 3, kind: output, shape index: {}]  }
   0x1   :  { %1835 = sst [smem:[#allocation12_spill]] %s1825_s0 }
   0x2   :  { %1836 = sst [smem:[#allocation13_spill]] %s1826_s1 }
   0x3   :  { %8 = vsyncpa [#allocation3], 0 }
   0x4   :  { %10 = vsyncpa [#allocation3 + $0x1], 0 }
   0x5   :  { %11 = vsyncpa [#allocation6], 0 }
   0x6   :  { %13 = vsyncpa [#allocation6 + $0x1], 0 }
   0x7   :  { %14 = vsyncpa [#allocation4], 0 }
   0x8   :  { %16 = vsyncpa [#allocation4 + $0x1], 0  ;;  %s1429_s12 = smov 0   ;;  %s1431_s13 = smov 0  }
   0x9   :  { %s1433_s14 = smov 0   ;;  %s1435_s15 = smov 0  }
   0xa LB: > { %s1450_s16 = sadd.s32 4294967295, %s1389_s15   ;;  %s1053_s17 = sadd.s32 4294967294, %s1389_s15   ;;  %s1389_s15 = sphi %s1435_s15, %s1856_s15   ;;  %s1385_s14 = sphi %s1433_s14, %s1855_s14   ;;  %s1381_s13 = sphi %s1431_s13, %s1854_s13   ;;  %s1377_s12 = sphi %s1429_s12, %s1853_s12  }
   0xb   : > { %s1454_s18 = sadd.s32 1, %s1389_s15   ;;  %s29_s19 = sadd.s32 1, %s1385_s14 }
   0xc   : > { %s26_s20 = ssub.s32 %s1389_s15, %s1454_s18  ;;  %p36_p0 = scmp.ne.s32.totalorder %s1385_s14, %s1381_s13 }
   0xd   : > { %p27_p1 = scmp.eq.s32.totalorder %s26_s20, 0  ;;  %p37_p2 = scmp.eq.s32.totalorder %s1389_s15, 0 }
   0xe   : > { %p42_p3 = scmp.ne.s32.totalorder %s1381_s13, %s1377_s12  ;;  %p43_p4 = scmp.eq.s32.totalorder %s1450_s16, 0 }
   0xf   : > { %s1466_s21 = scalar_select %p27_p1, %s1385_s14, %s29_s19  }
  0x10   : > { %p38_p5 = por %p37_p2, %p36_p0  ;;  %p1468_p6 = por %p43_p4, %p42_p3 }
  0x11   : > { %p118_p7 = scmp.eq.s32.totalorder %s1450_s16, 1  ;;  %p124_p8 = scmp.eq.s32.totalorder %s1053_s17, 1 }
  0x12   : > { %s1837_s22 = scalar_select %p1468_p6, 1, 0 }
  0x13   : > { %p1181_p10 = scmp.lt.s32.totalorder %s1389_s15, 2  ;;  %p1475_p11 = por %p118_p7, %p36_p0 }
  0x14   : > { %p1479_p12 = por %p124_p8, %p42_p3  ;;  %s144_s25 = sand.u32 1, %s1385_s14  }
  0x15   : > { %s1838_s23 = scalar_select %p1475_p11, 1, 0 }
  0x16   : > { %s1839_s24 = scalar_select %p1479_p12, 1, 0 }
  0x17   : > { %s1485_s26 = sshll.u32 %s1389_s15, 9  ;;  %s1489_s27 = sshll.u32 %s144_s25, 5 }
  0x18   : > { %p1491_p13 = pnand %p1181_p10, %p38_p5  ;;  %s165_s29 = sand.u32 1, %s1389_s15  }
  0x19   : > { %s1841_s1 = sld [smem:[#allocation13_spill]]  ;;  %s169_s6 = scalar_lea.vmem [#allocation5], %s1489_s27 }
  0x1a   : > { %s176_s7 = sshll.u32 %s169_s6, 4  ;;  %s1506_s8 = scalar_lea.sflag [#allocation6], %s165_s29  ;;  %s1503_s7 = int_to_ptr.vmem [resolvable:$true] %s176_s7 }
  0x1b   : > { %p1512_p2 = pneg %p1491_p13 }
  0x1f   : > { %s1500_s5 = scalar_lea.hbm %s1841_s1, %s1485_s26  ;;  %s1242_s19 = scalar_lea.hbm %s1841_s1, 1024 }
  0x20   : > { %s1237_s9 = scalar_lea.hbm %s1500_s5, 512  ;;  %p1243_p5 = scmp.lt.s32.totalorder %s1500_s5, %s1841_s1 }
  0x21   : > { %p1238_p1 = scmp.ne.s32.totalorder %s1500_s5, %s1237_s9  ;;  %p1244_p7 = scmp.lt.s32.totalorder %s1242_s19, %s1237_s9 }
  0x23   : > { %p1240_p3 = pnand %p1512_p2, %p1238_p1  ;;  %p1245_p8 = por %p1244_p7, %p1243_p5 }
  0x25   : > { %p1241_p4 = pneg %p1240_p3 }
  0x27   : > { %p1246_p10 = pnand %p1245_p8, %p1241_p4 }
  0x29   : > { %1249 = shalt.err (!%p1246_p10)
}
  0x2a   : > { %s1250_s29 = scalar_lea.vmem %s1503_s7, 512  ;;  %s1391_s4 = smov [#allocation5]  }
  0x2b   : > { %p1251_p9 = scmp.ne.s32.totalorder %s1503_s7, %s1250_s29  ;;  %s1255_s6 = sshll.u32 %s1391_s4, 4  ;;  %s1256_s6 = int_to_ptr.vmem [resolvable:$false] %s1255_s6 }
  0x2c   : > { %s1257_s11 = scalar_lea.vmem %s1256_s6, 1024  ;;  %p1258_p0 = scmp.lt.s32.totalorder %s1503_s7, %s1256_s6 }
  0x2d   : > { %p1253_p1 = pnand %p1251_p9, %p1512_p2  ;;  %p1259_p12 = scmp.lt.s32.totalorder %s1257_s11, %s1250_s29 }
  0x2f   : > { %p1254_p3 = pneg %p1253_p1  ;;  %p1260_p11 = por %p1259_p12, %p1258_p0 }
  0x31   : > { %p1261_p6 = pnand %p1260_p11, %p1254_p3 }
  0x33   : > { %1264 = shalt.err (!%p1261_p6)
}
  0x34   : > { %s1831_s9 = smov 128   ;;  %s1833_s17 = smov 8  }
  0x35   : > { %1173 = dma.hbm_to_vmem [thread:$0]  (!%p1491_p13), %s1500_s5, 512, %s1503_s7, %s1506_s8, %s1831_s9, %s1831_s9, %s1833_s17  }
  0x36   : > { %p205_p9 = scmp.lt.s32.totalorder %s1389_s15, 3  ;;  %s1843_s0 = sld [smem:[#allocation12_spill]] }
  0x37   : > { %p1844_p6 = scmp.ge.s32.totalorder %s1389_s15, 1  ;;  %s148_s4 = scalar_lea.vmem [#allocation2], %s1489_s27 }
  0x38   : > { %s155_s6 = sshll.u32 %s148_s4, 4  ;;  %s145_s5 = scalar_lea.sflag [#allocation3], %s144_s25  ;;  %s1552_s6 = int_to_ptr.vmem [resolvable:$true] %s155_s6 }
  0x39   : > { %p1547_p11 = pnand %p1844_p6, %p205_p9 }
  0x3b   : > { %s1845_s29 = scalar_select %p1547_p11, 1, 0 }
  0x3c   : > { %s1543_s30 = scalar_lea.hbm %s1843_s0, %s1485_s26  ;;  %s1270_s20 = scalar_lea.hbm %s1843_s0, 1024 }
  0x3d   : > { %s1265_s7 = scalar_lea.hbm %s1543_s30, 512  ;;  %p1271_p5 = scmp.lt.s32.totalorder %s1543_s30, %s1843_s0 }
  0x3e   : > { %p1266_p12 = scmp.ne.s32.totalorder %s1543_s30, %s1265_s7  ;;  %p1272_p7 = scmp.lt.s32.totalorder %s1270_s20, %s1265_s7 }
  0x40   : > { %p1268_p0 = pnand %p1266_p12, %p1512_p2  ;;  %p1273_p8 = por %p1272_p7, %p1271_p5 }
  0x42   : > { %p1269_p4 = pneg %p1268_p0 }
  0x44   : > { %p1274_p10 = pnand %p1273_p8, %p1269_p4 }
  0x46   : > { %1277 = shalt.err (!%p1274_p10)
}
  0x47   : > { %s1278_s25 = scalar_lea.vmem %s1552_s6, 512  ;;  %s1394_s4 = smov [#allocation2]  }
  0x48   : > { %p1279_p1 = scmp.ne.s32.totalorder %s1552_s6, %s1278_s25  ;;  %s1283_s11 = sshll.u32 %s1394_s4, 4  ;;  %s1284_s11 = int_to_ptr.vmem [resolvable:$false] %s1283_s11 }
  0x49   : > { %s1285_s19 = scalar_lea.vmem %s1284_s11, 1024  ;;  %p1286_p6 = scmp.lt.s32.totalorder %s1552_s6, %s1284_s11 }
  0x4a   : > { %p1281_p3 = pnand %p1279_p1, %p1512_p2  ;;  %p1287_p12 = scmp.lt.s32.totalorder %s1285_s19, %s1278_s25 }
  0x4c   : > { %p1282_p9 = pneg %p1281_p3  ;;  %p1288_p0 = por %p1287_p12, %p1286_p6 }
  0x4e   : > { %p1289_p11 = pnand %p1288_p0, %p1282_p9 }
  0x50   : > { %1292 = shalt.err (!%p1289_p11)
}
  0x51   : > { %s1846_s9 = smov 8   ;;  %s1847_s17 = smov 128  }
  0x52   : > { %1170 = dma.hbm_to_vmem [thread:$0]  (!%p1491_p13), %s1543_s30, 512, %s1552_s6, %s145_s5, %s1847_s17, %s1847_s17, %s1846_s9  }
  0x53   : > { %s1583_s4 = scalar_lea.hbm %s1827_s2, %s1485_s26  ;;  %s190_s25 = scalar_lea.vmem [#allocation7], %s1489_s27 }
  0x54   : > { %s197_s11 = sshll.u32 %s190_s25, 4  ;;  %s1293_s19 = scalar_lea.hbm %s1583_s4, 512  ;;  %s198_s11 = int_to_ptr.vmem [resolvable:$true] %s197_s11 }
  0x55   : > { %p1294_p11 = scmp.ne.s32.totalorder %s1583_s4, %s1293_s19  ;;  %s1298_s30 = scalar_lea.hbm %s1827_s2, 1024 }
  0x56   : > { %p1299_p7 = scmp.lt.s32.totalorder %s1583_s4, %s1827_s2  ;;  %p1300_p8 = scmp.lt.s32.totalorder %s1298_s30, %s1293_s19 }
  0x57   : > { %p1296_p4 = pnand %p1294_p11, %p1512_p2 }
  0x58   : > { %p1301_p10 = por %p1300_p8, %p1299_p7 }
  0x59   : > { %p1297_p5 = pneg %p1296_p4 }
  0x5b   : > { %p1302_p1 = pnand %p1301_p10, %p1297_p5 }
  0x5d   : > { %1305 = shalt.err (!%p1302_p1)
}
  0x5e   : > { %s1306_s26 = scalar_lea.vmem %s198_s11, 512  ;;  %s1395_s27 = smov [#allocation7]  }
  0x5f   : > { %p1307_p3 = scmp.ne.s32.totalorder %s198_s11, %s1306_s26  ;;  %s1311_s7 = sshll.u32 %s1395_s27, 4  ;;  %s1312_s7 = int_to_ptr.vmem [resolvable:$false] %s1311_s7 }
  0x60   : > { %s1313_s20 = scalar_lea.vmem %s1312_s7, 1024  ;;  %p1314_p12 = scmp.lt.s32.totalorder %s198_s11, %s1312_s7 }
  0x61   : > { %p1309_p9 = pnand %p1307_p3, %p1512_p2  ;;  %p1315_p0 = scmp.lt.s32.totalorder %s1313_s20, %s1306_s26 }
  0x63   : > { %p1310_p6 = pneg %p1309_p9  ;;  %p1316_p11 = por %p1315_p0, %p1314_p12 }
  0x65   : > { %p1317_p4 = pnand %p1316_p11, %p1310_p6 }
  0x67   : > { %1320 = shalt.err (!%p1317_p4)
}
  0x68   : > { %1176 = dma.hbm_to_vmem [thread:$0]  (!%p1491_p13), %s1583_s4, 512, %s198_s11, %s1506_s8, %s1847_s17, %s1847_s17, %s1846_s9  }
  0x69   : > { %p1848_p2 = scmp.ne.s32.totalorder %s1845_s29, 0 }
  0x6a   : > { %s1609_s0 = sand.u32 (!%p1848_p2), 1, %s1381_s13   ;;  %p1849_p5 = scmp.ne.s32.totalorder (!%p1848_p2), %s1837_s22, 0 }
  0x6b   : > { %209 = sbr.rel (%p1848_p2) target bundleno = 2448 (0x990), region = 32  ;;  %s1612_s1 = sshll.u32 (!%p1848_p2), %s1609_s0, 5 }
  0x6c   : > { %s212_s10 = scalar_lea.sflag (!%p1848_p2), [#allocation3], %s1609_s0  ;;  %s215_s28 = scalar_lea.vmem (!%p1848_p2), [#allocation2], %s1612_s1 }
  0x70   : > { %1364 = dma.done.wait (%p1849_p5), %s212_s10, 512  }
  0x71   : > { %1366 = vsyncadd (%p1849_p5), %s212_s10, 4294966784  ;;  %s220_s8 = sand.u32 1, %s1450_s16   ;;  %s224_s9 = scalar_lea.vmem [#allocation5], %s1612_s1 }
  0x72   : > { %s221_s29 = scalar_lea.sflag [#allocation6], %s220_s8 }
  0x73   : > { %1368 = dma.done.wait (%p1849_p5), %s221_s29, 1024  }
  0x74   : > { %1370 = vsyncadd (%p1849_p5), %s221_s29, 4294966272  ;;  %vm278_vm0 = vcmask 261120   ;;  %v273_v0 = vld [vmem:[%s224_s9 + $0x18] sm:$0xff]  ;;  %v272_v1 = vld [vmem:[%s224_s9 + $0x10] sm:$0xff]  ;;  %s1396_s22 = smov 97   ;;  %s1397_s17 = smov 1   ;;  %v388_v12 = vlaneseq }
  0x75   : > { %1131 = vmatprep.subr.msk.mxu0 %vm278_vm0, %v273_v0  ;;  %v266_v2 = vld [vmem:[%s215_s28] sm:$0xff]  ;;  %v271_v3 = vld [vmem:[%s224_s9 + $0x8] sm:$0xff]  ;;  %v268_v6 = vld [vmem:[%s215_s28 + $0x10] sm:$0xff]  ;;  %vm421_vm2 = vcmask 7168   ;;  %s1398_s4 = smov 2   ;;  %s1399_s25 = smov 98  }
  0x76   : > { %1132 = vmatpush3.xpose.msk.msra.mxu0 %vm278_vm0, %v273_v0  ;;  %1139 = vmatprep.mubr.msk.f32.mxu0 %vm278_vm0, %v266_v2  ;;  %v270_v4 = vld [vmem:[%s224_s9] sm:$0xff]  ;;  %v267_v5 = vld [vmem:[%s215_s28 + $0x8] sm:$0xff]  ;;  %v269_v7 = vld [vmem:[%s215_s28 + $0x18] sm:$0xff]  ;;  %v1642_v13 = vshrl.u32 %v388_v12, 7  ;;  %vm466_vm5 = vcmask 15360   ;;  %s1400_s11 = smov 4  }
  0x77   : > { %1133 = vmatprep.subr.msk.mxu0 %vm278_vm0, %v272_v1  ;;  %s1401_s19 = smov 100   ;;  %vm511_vm10 = vcmask 31744   ;;  %s1402_s30 = smov 8   ;;  %vm556_vm15 = vcmask 64512  }
  0x78   : > { %v1645_v14 = vadd.s32 24, %v1642_v13  ;;  %v1649_v18 = vadd.s32 8, %v1642_v13  ;;  %v1656_v23 = vadd.s32 16, %v1642_v13  ;;  %v426_v33 = vand.u32 1, %v1642_v13  ;;  %s1403_s6 = smov 104   ;;  %s1404_s5 = smov 16  }
  0x79   : > { %v471_v53 = vand.u32 2, %v1642_v13  ;;  %s1405_s26 = smov 112   ;;  %s233_s27 = scalar_lea.vmem [#allocation7], %s1612_s1 }
  0x7a   : > { %1134 = vmatpush3.xpose.msk.msra.mxu0 %vm278_vm0, %v272_v1  ;;  %v429_v15 = vand.u32 1, %v1645_v14  ;;  %v427_v22 = vand.u32 1, %v1649_v18  ;;  %v428_v26 = vand.u32 1, %v1656_v23  ;;  %v474_v32 = vand.u32 2, %v1645_v14  ;;  %s265_s7 = scalar_lea.vmem [#allocation8], %s1612_s1  ;;  %s1114_s10 = sshll.u32 %s1450_s16, 9 }
  0x7b   : > { %1135 = vmatprep.subr.msk.mxu0 %vm278_vm0, %v271_v3  ;;  %vm430_vm7 = vcmp.ne.s32.totalorder %v426_v33, 0  ;;  %v472_v38 = vand.u32 2, %v1649_v18  ;;  %v473_v43 = vand.u32 2, %v1656_v23  ;;  %v519_v52 = vand.u32 4, %v1645_v14  ;;  %s937_s20 = sshll.u32 %s265_s7, 4  ;;  %s1780_s29 = scalar_lea.hbm %s1828_s3, %s1114_s10  ;;  %s1774_s20 = int_to_ptr.vmem [resolvable:$true] %s937_s20 }
  0x7c   : > { %vm433_vm1 = vcmp.ne.s32.totalorder %v429_v15, 0  ;;  %vm431_vm3 = vcmp.ne.s32.totalorder %v427_v22, 0  ;;  %vm432_vm4 = vcmp.ne.s32.totalorder %v428_v26, 0  ;;  %vm478_vm6 = vcmp.ne.s32.totalorder %v474_v32, 0  ;;  %s924_s1 = scalar_lea.sflag [#allocation4], %s1609_s0  ;;  %s1321_s16 = scalar_lea.vmem %s1774_s20, 512 }
  0x7d   : > { %vm476_vm8 = vcmp.ne.s32.totalorder %v472_v38, 0  ;;  %vm477_vm9 = vcmp.ne.s32.totalorder %v473_v43, 0  ;;  %vm523_vm11 = vcmp.ne.s32.totalorder %v519_v52, 0  ;;  %vm475_vm12 = vcmp.ne.s32.totalorder %v471_v53, 0  ;;  %p1322_p13 = scmp.ne.s32.totalorder %s1774_s20, %s1321_s16  ;;  %p1850_p7 = scmp.ne.s32.totalorder %s1838_s23, 0 }
  0x7e   : > { %1136 = vmatpush3.xpose.msk.msra.mxu0 %vm278_vm0, %v271_v3  ;;  %v517_v58 = vand.u32 4, %v1649_v18  ;;  %v518_v63 = vand.u32 4, %v1656_v23  ;;  %s1407_s9 = smov [#allocation8]  }
  0x7f   : > { %1137 = vmatprep.subr.msk.mxu0 %vm278_vm0, %v270_v4  ;;  %p1323_p8 = pnand %p1322_p13, %p1850_p7 }
  0x80   : > { %vm521_vm13 = vcmp.ne.s32.totalorder %v517_v58, 0  ;;  %vm522_vm14 = vcmp.ne.s32.totalorder %v518_v63, 0 }
  0x81   : > { %p1324_p10 = pneg %p1323_p8 }
  0x82   : > { %1138 = vmatpush3.xpose.msk.msra.mxu0 %vm278_vm0, %v270_v4 }
  0x85   : > { %1140 = vmatmul.mubr.msk.f32.vlgmr.msra.gmra.mxu0 %vm278_vm0, %v267_v5 }
  0x86   : > { %1142 = vmatprep.mubr.msk.f32.mxu0 %vm278_vm0, %v268_v6 }
  0x89   : > { %1143 = vmatmul.mubr.msk.f32.gmra.mxu0 %vm278_vm0, %v269_v7 }
 0x145   : > { %v1141_v8 = vpop.f32.mrf.mxu0 }
 0x146   : > { %399 = vrot.lane.b32.xlu1 %v1141_v8, %s1396_s22 }
 0x147   : > { %v369_v9 = vpop.f32.mrf.mxu0 }
 0x149   : > { %v1144_v10 = vpop.f32.mrf.mxu0 }
 0x14a   : > { %411 = vrot.lane.b32.xlu1 %v1141_v8, %s1397_s17  ;;  %403 = vrot.lane.b32.xlu0 %v1144_v10, %s1396_s22 }
 0x14b   : > { %v379_v11 = vpop.f32.mrf.mxu0 }
 0x14e   : > { %415 = vrot.lane.b32.xlu0 %v1144_v10, %s1397_s17  ;;  %413 = vrot.lane.b32.xlu1 %v379_v11, %s1397_s17 }
 0x152   : > { %401 = vrot.lane.b32.xlu0 %v379_v11, %s1396_s22 }
 0x1b8   : > { %v400_v17 = vpop.permute.xlu1 %399 }
 0x1bc   : > { %v404_v16 = vpop.permute.xlu0 %403  ;;  %v412_v24 = vpop.permute.xlu1 %411 }
 0x1bd   : > { %v423_v25 = vsel %vm421_vm2, %v400_v17, %v412_v24 }
 0x1be   : > { %v435_v29 = vsel %vm431_vm3, %v423_v25, %v1141_v8 }
 0x1c0   : > { %v416_v19 = vpop.permute.xlu0 %415  ;;  %v414_v28 = vpop.permute.xlu1 %413 }
 0x1c1   : > { %v425_v20 = vsel %vm421_vm2, %v404_v16, %v416_v19  ;;  %v516_v19 = vand.u32 4, %v1642_v13 }
 0x1c2   : > { %v437_v21 = vsel %vm433_vm1, %v425_v20, %v1144_v10 }
 0x1c3   : > { %460 = vrot.lane.b32.xlu1 %v437_v21, %s1398_s4  ;;  %448 = vrot.lane.b32.xlu0 %v437_v21, %s1399_s25  ;;  %vm520_vm1 = vcmp.ne.s32.totalorder %v516_v19, 0 }
 0x1c4   : > { %v402_v27 = vpop.permute.xlu0 %401 }
 0x1c5   : > { %v424_v30 = vsel %vm421_vm2, %v402_v27, %v414_v28 }
 0x1c6   : > { %v436_v31 = vsel %vm432_vm4, %v424_v30, %v379_v11 }
 0x1c7   : > { %409 = vrot.lane.b32.xlu1 %v369_v9, %s1397_s17  ;;  %397 = vrot.lane.b32.xlu0 %v369_v9, %s1396_s22  ;;  %s1325_s22 = sshll.u32 %s1407_s9, 4  ;;  %s1326_s22 = int_to_ptr.vmem [resolvable:$false] %s1325_s22 }
 0x1c8   : > { %s1327_s17 = scalar_lea.vmem %s1326_s22, 1024  ;;  %p1328_p1 = scmp.lt.s32.totalorder %s1774_s20, %s1326_s22 }
 0x1c9   : > { %p1329_p3 = scmp.lt.s32.totalorder %s1327_s17, %s1321_s16 }
 0x1cb   : > { %456 = vrot.lane.b32.xlu1 %v435_v29, %s1398_s4  ;;  %444 = vrot.lane.b32.xlu0 %v435_v29, %s1399_s25  ;;  %p1330_p9 = por %p1329_p3, %p1328_p1 }
 0x1cd   : > { %p1331_p6 = pnand %p1330_p9, %p1324_p10 }
 0x1cf   : > { %458 = vrot.lane.b32.xlu1 %v436_v31, %s1398_s4  ;;  %446 = vrot.lane.b32.xlu0 %v436_v31, %s1399_s25 }
 0x235   : > { %v461_v34 = vpop.permute.xlu1 %460  ;;  %v449_v35 = vpop.permute.xlu0 %448 }
 0x236   : > { %v470_v36 = vsel %vm466_vm5, %v449_v35, %v461_v34 }
 0x237   : > { %v482_v37 = vsel %vm478_vm6, %v470_v36, %v437_v21 }
 0x238   : > { %505 = vrot.lane.b32.xlu1 %v482_v37, %s1400_s11  ;;  %493 = vrot.lane.b32.xlu0 %v482_v37, %s1401_s19 }
 0x239   : > { %v410_v39 = vpop.permute.xlu1 %409  ;;  %v398_v40 = vpop.permute.xlu0 %397 }
 0x23a   : > { %v422_v41 = vsel %vm421_vm2, %v398_v40, %v410_v39  ;;  %vm601_vm2 = vcmask 130048  }
 0x23b   : > { %v434_v42 = vsel %vm430_vm7, %v422_v41, %v369_v9 }
 0x23c   : > { %454 = vrot.lane.b32.xlu1 %v434_v42, %s1398_s4  ;;  %442 = vrot.lane.b32.xlu0 %v434_v42, %s1399_s25 }
 0x23d   : > { %v457_v44 = vpop.permute.xlu1 %456  ;;  %v445_v45 = vpop.permute.xlu0 %444 }
 0x23e   : > { %v468_v46 = vsel %vm466_vm5, %v445_v45, %v457_v44  ;;  %v1704_v45 = vand.u32 127, %v388_v12 }
 0x23f   : > { %v480_v47 = vsel %vm476_vm8, %v468_v46, %v435_v29 }
 0x240   : > { %501 = vrot.lane.b32.xlu1 %v480_v47, %s1400_s11  ;;  %489 = vrot.lane.b32.xlu0 %v480_v47, %s1401_s19 }
 0x241   : > { %v459_v48 = vpop.permute.xlu1 %458  ;;  %v447_v49 = vpop.permute.xlu0 %446 }
 0x242   : > { %v469_v50 = vsel %vm466_vm5, %v447_v49, %v459_v48 }
 0x243   : > { %v481_v51 = vsel %vm477_vm9, %v469_v50, %v436_v31 }
 0x244   : > { %503 = vrot.lane.b32.xlu1 %v481_v51, %s1400_s11  ;;  %491 = vrot.lane.b32.xlu0 %v481_v51, %s1401_s19 }
 0x2aa   : > { %v506_v54 = vpop.permute.xlu1 %505  ;;  %v494_v55 = vpop.permute.xlu0 %493 }
 0x2ab   : > { %v515_v56 = vsel %vm511_vm10, %v494_v55, %v506_v54 }
 0x2ac   : > { %v527_v57 = vsel %vm523_vm11, %v515_v56, %v482_v37 }
 0x2ad   : > { %550 = vrot.lane.b32.xlu1 %v527_v57, %s1402_s30  ;;  %538 = vrot.lane.b32.xlu0 %v527_v57, %s1403_s6 }
 0x2ae   : > { %v455_v59 = vpop.permute.xlu1 %454  ;;  %v443_v60 = vpop.permute.xlu0 %442 }
 0x2af   : > { %v467_v61 = vsel %vm466_vm5, %v443_v60, %v455_v59 }
 0x2b0   : > { %v479_v62 = vsel %vm475_vm12, %v467_v61, %v434_v42 }
 0x2b1   : > { %499 = vrot.lane.b32.xlu1 %v479_v62, %s1400_s11  ;;  %487 = vrot.lane.b32.xlu0 %v479_v62, %s1401_s19 }
 0x2b2   : > { %v502_v0 = vpop.permute.xlu1 %501  ;;  %v490_v1 = vpop.permute.xlu0 %489 }
 0x2b3   : > { %v513_v2 = vsel %vm511_vm10, %v490_v1, %v502_v0 }
 0x2b4   : > { %v525_v3 = vsel %vm521_vm13, %v513_v2, %v480_v47 }
 0x2b5   : > { %546 = vrot.lane.b32.xlu1 %v525_v3, %s1402_s30  ;;  %534 = vrot.lane.b32.xlu0 %v525_v3, %s1403_s6 }
 0x2b6   : > { %v504_v4 = vpop.permute.xlu1 %503  ;;  %v492_v5 = vpop.permute.xlu0 %491 }
 0x2b7   : > { %v514_v6 = vsel %vm511_vm10, %v492_v5, %v504_v4 }
 0x2b8   : > { %v526_v7 = vsel %vm522_vm14, %v514_v6, %v481_v51 }
 0x2b9   : > { %593 = vrot.lane.b32.xlu1 %v526_v7, %s1404_s5  ;;  %581 = vrot.lane.b32.xlu0 %v526_v7, %s1405_s26 }
 0x31f   : > { %v551_v8 = vpop.permute.xlu1 %550  ;;  %v539_v9 = vpop.permute.xlu0 %538 }
 0x320   : > { %v560_v10 = vsel %vm556_vm15, %v539_v9, %v551_v8 }
 0x321   : > { %595 = vrot.lane.b32.xlu1 %v560_v10, %s1404_s5  ;;  %583 = vrot.lane.b32.xlu0 %v560_v10, %s1405_s26 }
 0x323   : > { %v500_v11 = vpop.permute.xlu1 %499  ;;  %v488_v15 = vpop.permute.xlu0 %487 }
 0x324   : > { %v512_v20 = vsel %vm511_vm10, %v488_v15, %v500_v11 }
 0x325   : > { %v524_v25 = vsel %vm520_vm1, %v512_v20, %v479_v62 }
 0x326   : > { %v618_v28 = vsel %vm278_vm0, %v524_v25, 0.0 }
 0x327   : > { %v547_v16 = vpop.permute.xlu1 %546  ;;  %v535_v17 = vpop.permute.xlu0 %534 }
 0x328   : > { %v558_v24 = vsel %vm556_vm15, %v535_v17, %v547_v16 }
 0x329   : > { %v619_v27 = vsel %vm278_vm0, %v558_v24, 0.0 }
 0x32a   : > { %v620_v30 = vadd.f32 %v619_v27, %v618_v28 }
 0x32b   : > { %v594_v21 = vpop.permute.xlu1 %593  ;;  %v582_v22 = vpop.permute.xlu0 %581 }
 0x32c   : > { %v604_v26 = vsel %vm601_vm2, %v582_v22, %v594_v21 }
 0x32d   : > { %v621_v29 = vsel %vm278_vm0, %v604_v26, 0.0 }
 0x32e   : > { %v622_v33 = vadd.f32 %v621_v29, %v620_v30 }
 0x393   : > { %v596_v31 = vpop.permute.xlu1 %595  ;;  %v584_v32 = vpop.permute.xlu0 %583 }
 0x394   : > { %v605_v34 = vsel %vm601_vm2, %v584_v32, %v596_v31 }
 0x395   : > { %v623_v35 = vsel %vm278_vm0, %v605_v34, 0.0 }
 0x396   : > { %v624_v36 = vadd.f32 %v623_v35, %v622_v33 }
 0x398   : > { %v625_v37 = vrot.slane %v624_v36, 4 }
 0x39a   : > { %v626_v38 = vadd.f32 %v625_v37, %v624_v36 }
 0x39c   : > { %v627_v39 = vrot.slane %v626_v38, 2 }
 0x39e   : > { %v628_v40 = vadd.f32 %v627_v39, %v626_v38 }
 0x3a0   : > { %v629_v41 = vrot.slane %v628_v40, 1 }
 0x3a2   : > { %v630_v42 = vadd.f32 %v629_v41, %v628_v40 }
 0x3a4   : > { %v631_v43 = vmul.f32 0.03125, %v630_v42 }
 0x3a6   : > { %v634_v44 = vsel %vm278_vm0, %v631_v43, -inf }
 0x3a7   : > { %635 = vmax.xlane.f32.xlu0 %v634_v44 }
 0x430   : > { %v636_v46 = vpop.xlane.xlu0 %635 }
 0x431   : > { %vm637_vm3 = vcmp.ge.f32.partialorder %v631_v43, %v636_v46  ;;  %v698_v17 = vsub.f32 %v636_v46, %v636_v46 }
 0x432   : > { %v638_v47 = vsel %vm637_vm3, %v1704_v45, 32 }
 0x433   : > { %v639_v48 = vsel %vm278_vm0, %v638_v47, 2147483647  ;;  %v699_v20 = vmul.f32 1.442695, %v698_v17 }
 0x434   : > { %v641_v49 = vshra.s32 %v639_v48, 16  ;;  %v640_v51 = vand.u32 65535, %v639_v48 }
 0x436   : > { %v643_v50 = vcvt.s32.f32 %v641_v49  ;;  %v642_v53 = vcvt.s32.f32 %v640_v51 }
 0x438   : > { %644 = vmin.xlane.f32.xlu1 %v643_v50 }
 0x4c1   : > { %v645_v52 = vpop.xlane.xlu1 %644 }
 0x4c2   : > { %vm646_vm4 = vcmp.eq.f32.partialorder %v643_v50, %v645_v52  ;;  %v651_v55 = vcvt.f32.s32 %v645_v52 }
 0x4c3   : > { %v647_v54 = vsel %vm646_vm4, %v642_v53, inf }
 0x4c4   : > { %648 = vmin.xlane.f32.xlu0 %v647_v54  ;;  %v652_v57 = vshll.u32 %v651_v55, 16 }
 0x54d   : > { %v649_v56 = vpop.xlane.xlu0 %648 }
 0x54e   : > { %v650_v12 = vcvt.f32.s32 %v649_v56 }
 0x550   : > { %v653_v58 = vadd.s32 %v652_v57, %v650_v12 }
 0x552   : > { %vm654_vm5 = vcmp.eq.s32.totalorder %v1704_v45, %v653_v58  ;;  %v712_v34 = vadd.s32 %v653_v58, %v1649_v18  ;;  %v713_v35 = vadd.s32 %v653_v58, %v1656_v23  ;;  %v711_v36 = vadd.s32 %v653_v58, %v1642_v13 }
 0x553   : > { %v655_v59 = vsel %vm654_vm5, -inf, %v631_v43  ;;  %v714_v37 = vadd.s32 %v653_v58, %v1645_v14 }
 0x554   : > { %v656_v60 = vsel %vm278_vm0, %v655_v59, -inf  ;;  %v1078_v42 = vadd.s32 4294967264, %v711_v36  ;;  %vm716_vm10 = vcmp.ge.s32.totalorder %v712_v34, 32  ;;  %v1079_v43 = vadd.s32 4294967264, %v712_v34 }
 0x555   : > { %657 = vmax.xlane.f32.xlu0 %v656_v60  ;;  %vm717_vm11 = vcmp.ge.s32.totalorder %v713_v35, 32  ;;  %vm715_vm12 = vcmp.ge.s32.totalorder %v711_v36, 32  ;;  %v1080_v44 = vadd.s32 4294967264, %v713_v35  ;;  %vm718_vm13 = vcmp.ge.s32.totalorder %v714_v37, 32 }
 0x556   : > { %v723_v51 = vsel %vm715_vm12, %v1078_v42, %v711_v36  ;;  %v724_v52 = vsel %vm716_vm10, %v1079_v43, %v712_v34 }
 0x557   : > { %v725_v53 = vsel %vm717_vm11, %v1080_v44, %v713_v35  ;;  %vm728_vm3 = vcmp.eq.s32.totalorder %v1704_v45, %v723_v51  ;;  %vm729_vm4 = vcmp.eq.s32.totalorder %v1704_v45, %v724_v52 }
 0x558   : > { %vm730_vm5 = vcmp.eq.s32.totalorder %v1704_v45, %v725_v53 }
 0x5de   : > { %v658_v61 = vpop.xlane.xlu0 %657 }
 0x5df   : > { %vm659_vm6 = vcmp.ge.f32.partialorder %v655_v59, %v658_v61  ;;  %v701_v16 = vsub.f32 %v658_v61, %v636_v46 }
 0x5e0   : > { %v660_v62 = vsel %vm659_vm6, %v1704_v45, 32 }
 0x5e1   : > { %v661_v63 = vsel %vm278_vm0, %v660_v62, 2147483647  ;;  %v702_v19 = vmul.f32 1.442695, %v701_v16 }
 0x5e2   : > { %v663_v0 = vshra.s32 %v661_v63, 16  ;;  %v662_v2 = vand.u32 65535, %v661_v63 }
 0x5e3   : > { %1229 = vpow2.f32 %v702_v19 }
 0x5e4   : > { %v665_v1 = vcvt.s32.f32 %v663_v0  ;;  %v664_v4 = vcvt.s32.f32 %v662_v2  ;;  %1231 = vpow2.f32 %v699_v20 }
 0x5e6   : > { %666 = vmin.xlane.f32.xlu1 %v665_v1 }
 0x5f0   : > { %v1230_v29 = vpop.eup %1229 }
 0x5f1   : > { %v1232_v30 = vpop.eup %1231 }
 0x5f2   : > { %v707_v31 = vadd.f32 %v1232_v30, %v1230_v29 }
 0x66f   : > { %v667_v3 = vpop.xlane.xlu1 %666 }
 0x670   : > { %vm668_vm7 = vcmp.eq.f32.partialorder %v665_v1, %v667_v3  ;;  %v673_v6 = vcvt.f32.s32 %v667_v3 }
 0x671   : > { %v669_v5 = vsel %vm668_vm7, %v664_v4, inf }
 0x672   : > { %670 = vmin.xlane.f32.xlu0 %v669_v5  ;;  %v674_v8 = vshll.u32 %v673_v6, 16 }
 0x6fb   : > { %v671_v7 = vpop.xlane.xlu0 %670 }
 0x6fc   : > { %v672_v9 = vcvt.f32.s32 %v671_v7 }
 0x6fe   : > { %v675_v10 = vadd.s32 %v674_v8, %v672_v9 }
 0x700   : > { %vm676_vm8 = vcmp.eq.s32.totalorder %v1704_v45, %v675_v10  ;;  %v749_v38 = vadd.s32 %v675_v10, %v1649_v18  ;;  %v750_v39 = vadd.s32 %v675_v10, %v1656_v23  ;;  %v751_v40 = vadd.s32 %v675_v10, %v1645_v14 }
 0x701   : > { %v677_v11 = vsel %vm676_vm8, -inf, %v655_v59  ;;  %v748_v41 = vadd.s32 %v675_v10, %v1642_v13  ;;  %v1406_v59 = vmov 0.0  }
 0x702   : > { %v678_v15 = vsel %vm278_vm0, %v677_v11, -inf  ;;  %v1087_v48 = vadd.s32 4294967264, %v749_v38  ;;  %v1088_v49 = vadd.s32 4294967264, %v750_v39  ;;  %v1089_v50 = vadd.s32 4294967264, %v751_v40 }
 0x703   : > { %679 = vmax.xlane.f32.xlu1 %v678_v15  ;;  %v1086_v47 = vadd.s32 4294967264, %v748_v41  ;;  %vm752_vm14 = vcmp.ge.s32.totalorder %v748_v41, 32  ;;  %vm753_vm15 = vcmp.ge.s32.totalorder %v749_v38, 32  ;;  %vm754_vm1 = vcmp.ge.s32.totalorder %v750_v39, 32 }
 0x704   : > { %vm755_vm2 = vcmp.ge.s32.totalorder %v751_v40, 32  ;;  %v761_v56 = vsel %vm753_vm15, %v1087_v48, %v749_v38  ;;  %v762_v57 = vsel %vm754_vm1, %v1088_v49, %v750_v39  ;;  %v1082_v60 = vsel %vm728_vm3, 1.0, %v1406_v59 }
 0x705   : > { %v760_v55 = vsel %vm752_vm14, %v1086_v47, %v748_v41  ;;  %v763_v12 = vsel %vm755_vm2, %v1089_v50, %v751_v40  ;;  %vm766_vm8 = vcmp.eq.s32.totalorder %v1704_v45, %v761_v56  ;;  %v1083_v61 = vsel %vm729_vm4, 1.0, %v1406_v59 }
 0x706   : > { %vm765_vm7 = vcmp.eq.s32.totalorder %v1704_v45, %v760_v55  ;;  %vm768_vm10 = vcmp.eq.s32.totalorder %v1704_v45, %v763_v12  ;;  %v1084_v0 = vsel %vm730_vm5, 1.0, %v1406_v59  ;;  %v1091_v3 = vsel %vm766_vm8, 1.0, %v1406_v59 }
 0x707   : > { %v1090_v2 = vsel %vm765_vm7, 1.0, %v1406_v59  ;;  %v1093_v5 = vsel %vm768_vm10, 1.0, %v1406_v59 }
 0x78c   : > { %v680_v21 = vpop.xlane.xlu1 %679 }
 0x78d   : > { %vm681_vm9 = vcmp.ge.f32.partialorder %v677_v11, %v680_v21  ;;  %v704_v22 = vsub.f32 %v680_v21, %v636_v46  ;;  %v1081_v46 = vadd.s32 4294967264, %v714_v37 }
 0x78e   : > { %v682_v24 = vsel %vm681_vm9, %v1704_v45, 32  ;;  %vm767_vm9 = vcmp.eq.s32.totalorder %v1704_v45, %v762_v57 }
 0x78f   : > { %v705_v25 = vmul.f32 1.442695, %v704_v22  ;;  %v1716_v26 = vsel %vm278_vm0, %v682_v24, 2147483647  ;;  %v726_v54 = vsel %vm718_vm13, %v1081_v46, %v714_v37  ;;  %v1092_v4 = vsel %vm767_vm9, 1.0, %v1406_v59 }
 0x790   : > { %v685_v27 = vshra.s32 %v1716_v26, 16  ;;  %vm731_vm6 = vcmp.eq.s32.totalorder %v1704_v45, %v726_v54  ;;  %v684_v22 = vand.u32 65535, %v1716_v26 }
 0x791   : > { %1233 = vpow2.f32 %v705_v25  ;;  %v1085_v1 = vsel %vm731_vm6, 1.0, %v1406_v59 }
 0x792   : > { %v1719_v28 = vcvt.s32.f32 %v685_v27  ;;  %v686_v25 = vcvt.s32.f32 %v684_v22 }
 0x794   : > { %688 = vmin.xlane.f32.xlu0 %v1719_v28 }
 0x79e   : > { %v1722_v32 = vpop.eup %1233 }
 0x79f   : > { %v708_v33 = vadd.f32 %v1722_v32, %v707_v31  ;;  %v275_v31 = vld [vmem:[%s233_s27 + $0x8] sm:$0xff] }
 0x7a1   : > { %1235 = vrcp.f32 %v708_v33  ;;  %v274_v33 = vld [vmem:[%s233_s27] sm:$0xff] }
 0x7ae   : > { %v1236_v58 = vpop.eup %1235 }
 0x7af   : > { %v727_v62 = vmul.f32 %v1236_v58, %v1232_v30  ;;  %v764_v63 = vmul.f32 %v1236_v58, %v1230_v29  ;;  %v277_v29 = vld [vmem:[%s233_s27 + $0x18] sm:$0xff]  ;;  %v276_v30 = vld [vmem:[%s233_s27 + $0x10] sm:$0xff]  ;;  %v801_v46 = vmul.f32 %v1236_v58, %v1722_v32 }
 0x7b0   : > { %1145 = vmatprep.subr.mxu1 %v277_v29 }
 0x7b1   : > { %v740_v6 = vmul.f32 %v1082_v60, %v727_v62  ;;  %v777_v7 = vmul.f32 %v1090_v2, %v764_v63  ;;  %v741_v8 = vmul.f32 %v1083_v61, %v727_v62  ;;  %v778_v9 = vmul.f32 %v1091_v3, %v764_v63  ;;  %1146 = vmatpush3.msra.mxu1 %v277_v29 }
 0x7b2   : > { %v742_v10 = vmul.f32 %v1084_v0, %v727_v62  ;;  %v779_v11 = vmul.f32 %v1092_v4, %v764_v63  ;;  %v743_v15 = vmul.f32 %v1085_v1, %v727_v62  ;;  %v780_v16 = vmul.f32 %v1093_v5, %v764_v63  ;;  %1147 = vmatprep.subr.mxu1 %v276_v30 }
 0x7b3   : > { %v781_v17 = vadd.f32 %v777_v7, %v740_v6  ;;  %v782_v19 = vadd.f32 %v778_v9, %v741_v8  ;;  %1148 = vmatpush3.msra.mxu1 %v276_v30 }
 0x7b4   : > { %v783_v20 = vadd.f32 %v779_v11, %v742_v10  ;;  %v784_v21 = vadd.f32 %v780_v16, %v743_v15  ;;  %1149 = vmatprep.subr.mxu1 %v275_v31 }
 0x7b5   : > { %1150 = vmatpush3.msra.mxu1 %v275_v31 }
 0x7b6   : > { %1151 = vmatprep.subr.mxu1 %v274_v33 }
 0x7b7   : > { %1152 = vmatpush3.msra.mxu1 %v274_v33 }
 0x81d   : > { %v689_v24 = vpop.xlane.xlu0 %688 }
 0x81e   : > { %vm690_vm11 = vcmp.eq.f32.partialorder %v1719_v28, %v689_v24  ;;  %v695_v26 = vcvt.f32.s32 %v689_v24 }
 0x81f   : > { %v691_v27 = vsel %vm690_vm11, %v686_v25, inf }
 0x820   : > { %692 = vmin.xlane.f32.xlu1 %v691_v27  ;;  %v696_v35 = vshll.u32 %v695_v26, 16 }
 0x8a9   : > { %v693_v34 = vpop.xlane.xlu1 %692 }
 0x8aa   : > { %v694_v36 = vcvt.f32.s32 %v693_v34 }
 0x8ac   : > { %v697_v28 = vadd.s32 %v696_v35, %v694_v36 }
 0x8ae   : > { %v785_v37 = vadd.s32 %v697_v28, %v1642_v13  ;;  %v786_v38 = vadd.s32 %v697_v28, %v1649_v18  ;;  %v787_v39 = vadd.s32 %v697_v28, %v1656_v23  ;;  %v788_v40 = vadd.s32 %v697_v28, %v1645_v14 }
 0x8b0   : > { %vm790_vm12 = vcmp.ge.s32.totalorder %v786_v38, 32  ;;  %vm791_vm13 = vcmp.ge.s32.totalorder %v787_v39, 32  ;;  %vm792_vm14 = vcmp.ge.s32.totalorder %v788_v40, 32  ;;  %v1095_v41 = vadd.s32 4294967264, %v786_v38 }
 0x8b1   : > { %v1096_v42 = vadd.s32 4294967264, %v787_v39  ;;  %v1097_v43 = vadd.s32 4294967264, %v788_v40  ;;  %vm789_vm15 = vcmp.ge.s32.totalorder %v785_v37, 32  ;;  %v1094_v44 = vadd.s32 4294967264, %v785_v37 }
 0x8b2   : > { %v798_v47 = vsel %vm790_vm12, %v1095_v41, %v786_v38 }
 0x8b3   : > { %v797_v48 = vsel %vm789_vm15, %v1094_v44, %v785_v37  ;;  %vm803_vm1 = vcmp.eq.s32.totalorder %v1704_v45, %v798_v47  ;;  %v799_v13 = vsel %vm791_vm13, %v1096_v42, %v787_v39  ;;  %v800_v18 = vsel %vm792_vm14, %v1097_v43, %v788_v40 }
 0x8b4   : > { %vm802_vm2 = vcmp.eq.s32.totalorder %v1704_v45, %v797_v48  ;;  %v1099_v14 = vsel %vm803_vm1, 1.0, %v1406_v59  ;;  %vm804_vm3 = vcmp.eq.s32.totalorder %v1704_v45, %v799_v13  ;;  %vm805_vm4 = vcmp.eq.s32.totalorder %v1704_v45, %v800_v18 }
 0x8b5   : > { %v1098_v23 = vsel %vm802_vm2, 1.0, %v1406_v59  ;;  %v815_v49 = vmul.f32 %v1099_v14, %v801_v46  ;;  %v1100_v32 = vsel %vm804_vm3, 1.0, %v1406_v59  ;;  %v1101_v50 = vsel %vm805_vm4, 1.0, %v1406_v59 }
 0x8b6   : > { %v814_v51 = vmul.f32 %v1098_v23, %v801_v46  ;;  %v816_v52 = vmul.f32 %v1100_v32, %v801_v46  ;;  %v817_v53 = vmul.f32 %v1101_v50, %v801_v46 }
 0x8b7   : > { %v819_v54 = vadd.f32 %v815_v49, %v782_v19 }
 0x8b8   : > { %v818_v55 = vadd.f32 %v814_v51, %v781_v17  ;;  %v820_v56 = vadd.f32 %v816_v52, %v783_v20  ;;  %v821_v57 = vadd.f32 %v817_v53, %v784_v21 }
 0x8ba   : > { %1153 = vmatprep.mubr.msk.f32.mxu1 %vm278_vm0, %v818_v55 }
 0x8bb   : > { %1154 = vmatmul.mubr.msk.f32.vlgmr.msra.gmra.mxu1 %vm278_vm0, %v819_v54 }
 0x8bc   : > { %1156 = vmatprep.mubr.msk.f32.mxu1 %vm278_vm0, %v820_v56 }
 0x8bf   : > { %1157 = vmatmul.mubr.msk.f32.gmra.mxu1 %vm278_vm0, %v821_v57 }
 0x97b   : > { %v1155_v45 = vpop.f32.mrf.mxu1 }
 0x97c   : > { %920 = vst.msk [vmem:[%s265_s7 + $0x8] sm:$0xff] %vm278_vm0, %v1155_v45 }
 0x97d   : > { %v900_v12 = vpop.f32.mrf.mxu1 }
 0x97e   : > { %919 = vst.msk [vmem:[%s265_s7] sm:$0xff] %vm278_vm0, %v900_v12 }
 0x97f   : > { %v1158_v58 = vpop.f32.mrf.mxu1 }
 0x980   : > { %922 = vst.msk [vmem:[%s265_s7 + $0x18] sm:$0xff] %vm278_vm0, %v1158_v58 }
 0x981   : > { %v910_v59 = vpop.f32.mrf.mxu1 }
 0x982   : > { %921 = vst.msk [vmem:[%s265_s7 + $0x10] sm:$0xff] %vm278_vm0, %v910_v59 }
 0x983   : > { %1334 = shalt.err (!%p1331_p6)
}
 0x984   : > { %s1335_s4 = scalar_lea.hbm %s1780_s29, 512  ;;  %s1339_s19 = scalar_lea.hbm %s1828_s3, 1024 }
 0x985   : > { %p1336_p12 = scmp.ne.s32.totalorder %s1780_s29, %s1335_s4  ;;  %p1340_p4 = scmp.lt.s32.totalorder %s1780_s29, %s1828_s3 }
 0x986   : > { %p1341_p2 = scmp.lt.s32.totalorder %s1339_s19, %s1335_s4 }
 0x987   : > { %p1337_p0 = pnand %p1336_p12, %p1850_p7 }
 0x988   : > { %p1342_p5 = por %p1341_p2, %p1340_p4 }
 0x989   : > { %p1338_p11 = pneg %p1337_p0 }
 0x98b   : > { %p1343_p13 = pnand %p1342_p5, %p1338_p11 }
 0x98d   : > { %1346 = shalt.err (!%p1343_p13)
}
 0x98e   : > { %s1408_s26 = smov 128  }
 0x98f   : > { %1165 = dma.vmem_to_hbm [thread:$0]  (%p1850_p7), %s1774_s20, 512, %s1780_s29, %s924_s1, %s1408_s26, %s1408_s26, %s1402_s30  }
 0x990 PF: > { %s952_s27 = sand.u32 1, %s1377_s12   ;;  %p1851_p8 = scmp.ne.s32.totalorder %s1839_s24, 0 }
 0x991   : > { %p1852_p10 = scmp.ge.s32.totalorder %s1389_s15, 2  ;;  %s953_s7 = scalar_lea.sflag [#allocation4], %s952_s27 }
 0x993   : > { %p1178_p1 = pnand %p1852_p10, %p1851_p8 }
 0x995   : > { %p1179_p3 = pneg %p1178_p1 }
 0x997   : > { %1372 = dma.done.wait (%p1179_p3), %s953_s7, 512  }
 0x998   : > { %1374 = vsyncadd (%p1179_p3), %s953_s7, 4294966784  ;;  %p19_p9 = scmp.ge.s32.totalorder %s1454_s18, 4   ;;  %s1853_s12 = smov %s1381_s13 }
 0x999   : > { %s1854_s13 = smov %s1385_s14  ;;  %s1855_s14 = smov %s1466_s21 }
 0x99a   : > { %s1856_s15 = smov %s1454_s18  ;;  %21 = sbr.rel (!%p19_p9) target bundleno = 10 (0xa), region = 101 }
 0x99f   :  { %958 = vsyncpa [#allocation3], 1 }
 0x9a0   :  { %960 = vsyncpa [#allocation3 + $0x1], 1 }
 0x9a1   :  { %961 = vsyncpa [#allocation6], 1 }
 0x9a2   :  { %963 = vsyncpa [#allocation6 + $0x1], 1 }
 0x9a3   :  { %964 = vsyncpa [#allocation4], 1 }
 0x9a4   :  { %966 = vsyncpa [#allocation4 + $0x1], 1 }

</bundles_post_ra>
